<compile_context>
chip_gen: v7x
topology: tpu7x:2x2x1
jax: 0.10.0
libtpu: 0.0.40
codegen_flags: <defaults>
</compile_context>

<pallas_src>
import jax
import jax.numpy as jnp
from jax.experimental import pallas as pl
from jax.experimental.pallas import tpu as pltpu

D_IN, D_H1, D_H2, D_OUT = 30, 15, 5, 2

_LANE = 128                      # every VMEM block pads its last dim to 128 lanes
_VMEM_STREAM_BUDGET = 26 << 20   # budget for double-buffered streamed blocks
_VMEM_LIMIT_BYTES = 48 << 20     # scoped VMEM limit (< v7x 64 MiB physical)


def _round_up(n, m):
    return ((n + m - 1) // m) * m


def _mlp_kernel(x_ref, w1_ref, b1_ref, w2_ref, b2_ref, w3_ref, b3_ref,
                logits_ref, hidden_ref):
    # One (TM, 30) batch tile per grid step; weights are grid-invariant.
    x = x_ref[...]                                             # (TM, 30)

    # fc1 + ReLU  (MXU matmul, f32 accumulate; epilogue in f32)
    h1 = jnp.dot(x, w1_ref[...], preferred_element_type=jnp.float32)
    h1 = jnp.maximum(h1 + b1_ref[...], 0.0)                    # (TM, 15) f32
    hidden_ref[...] = h1.astype(hidden_ref.dtype)              # returned activation

    # fc2 + ReLU
    h2 = jnp.dot(h1.astype(w2_ref.dtype), w2_ref[...],
                 preferred_element_type=jnp.float32)
    h2 = jnp.maximum(h2 + b2_ref[...], 0.0)                    # (TM, 5) f32

    # fc3 (no activation)
    h3 = jnp.dot(h2.astype(w3_ref.dtype), w3_ref[...],
                 preferred_element_type=jnp.float32)
    logits_ref[...] = (h3 + b3_ref[...]).astype(logits_ref.dtype)


def _net_forward_reference(x, params):
    """Plain-JAX forward (same math as the PyTorch module)."""
    h1 = jnp.maximum(x @ params["w1"].T + params["b1"], 0.0)
    h2 = jnp.maximum(h1 @ params["w2"].T + params["b2"], 0.0)
    logits = h2 @ params["w3"].T + params["b3"]
    return logits, h1


def net_forward(x, params, *, tile_m=8192, min_pallas_batch=2048):
    """params: dict with fc{1,2,3} weights (out,in) and biases (out,) like PyTorch.

    Returns (logits, relu(fc1(x))) -- same as Net.forward.
    """
    assert x.ndim == 2 and x.shape[1] == D_IN
    B = x.shape[0]

    # Tiny batches: launch + one grid step dominates a 30->15->5->2 MLP; let
    # XLA fuse the einsums instead.
    if B < min_pallas_batch:
        return _net_forward_reference(x, params)

    # Matmul operand dtype follows x (no wrapper-side cast of x -- that would be
    # an extra HBM pass).  Accumulation/epilogue are always f32.
    mm_dtype = jnp.bfloat16 if x.dtype == jnp.bfloat16 else jnp.float32
    xk = x if x.dtype == mm_dtype else x.astype(mm_dtype)  # no-op for f32/bf16 in

    # Glue: pre-transpose weights to [in, out]; biases to (1, out) in f32.
    # These are tiny (<= 450 elements each).
    w1 = params["w1"].T.astype(mm_dtype)          # (30, 15)
    w2 = params["w2"].T.astype(mm_dtype)          # (15, 5)
    w3 = params["w3"].T.astype(mm_dtype)          # (5, 2)
    b1 = params["b1"].reshape(1, D_H1).astype(jnp.float32)
    b2 = params["b2"].reshape(1, D_H2).astype(jnp.float32)
    b3 = params["b3"].reshape(1, D_OUT).astype(jnp.float32)

    # --- batch tile selection ---------------------------------------------
    # Lane-padded, double-buffered VMEM cost per batch row:
    #   x block:      128 lanes * itemsize(mm_dtype)
    #   hidden block: 128 lanes * 4 (f32)
    #   logits block: 128 lanes * 4 (f32)
    x_lane_bytes = _LANE * jnp.dtype(mm_dtype).itemsize
    per_row_bytes = 2 * (x_lane_bytes + 2 * _LANE * 4)   # double buffered
    tm_vmem_cap = max(8, (_VMEM_STREAM_BUDGET // per_row_bytes) // 8 * 8)

    tm = min(_round_up(tile_m, 8), _round_up(B, 8), tm_vmem_cap)
    grid = (pl.cdiv(B, tm),)   # ragged last block: OOB reads feed only rows
                               # whose writes are dropped (rows independent).

    def const_spec(shape):
        # Grid-invariant block: fetched once, stays resident in VMEM.
        return pl.BlockSpec(shape, lambda i: (0, 0))

    itemsize = jnp.dtype(mm_dtype).itemsize
    param_bytes = sum(int(a.size) * a.dtype.itemsize
                      for a in (w1, b1, w2, b2, w3, b3))
    cost = pl.CostEstimate(
        flops=2 * B * (D_IN * D_H1 + D_H1 * D_H2 + D_H2 * D_OUT),
        transcendentals=0,
        bytes_accessed=B * (D_IN * itemsize + (D_H1 + D_OUT) * 4) + param_bytes,
    )

    logits, hidden = pl.pallas_call(
        _mlp_kernel,
        out_shape=(
            jax.ShapeDtypeStruct((B, D_OUT), jnp.float32),   # fc3 output
            jax.ShapeDtypeStruct((B, D_H1), jnp.float32),    # relu(fc1) output
        ),
        grid=grid,
        in_specs=[
            pl.BlockSpec((tm, D_IN), lambda i: (i, 0)),          # x: streamed tiles
            const_spec((D_IN, D_H1)), const_spec((1, D_H1)),     # fc1 (resident)
            const_spec((D_H1, D_H2)), const_spec((1, D_H2)),     # fc2 (resident)
            const_spec((D_H2, D_OUT)), const_spec((1, D_OUT)),   # fc3 (resident)
        ],
        out_specs=(
            pl.BlockSpec((tm, D_OUT), lambda i: (i, 0)),
            pl.BlockSpec((tm, D_H1), lambda i: (i, 0)),
        ),
        compiler_params=pltpu.CompilerParams(
            dimension_semantics=("parallel",),        # v7x dual-TC sharding
            vmem_limit_bytes=_VMEM_LIMIT_BYTES,       # raise v5e/v6e scoped default
        ),
        cost_estimate=cost,
    )(xk, w1, b1, w2, b2, w3, b3)

    return logits, hidden


def init_params(key):
    """Deterministic parameter init matching the shapes of the PyTorch module."""
    ks = jax.random.split(key, 6)

    def uniform_like_torch(k, shape, fan_in):
        bound = 1.0 / jnp.sqrt(fan_in)
        return jax.random.uniform(k, shape, jnp.float32, -bound, bound)

    return {
        "w1": uniform_like_torch(ks[0], (D_H1, D_IN), D_IN),
        "b1": uniform_like_torch(ks[1], (D_H1,), D_IN),
        "w2": uniform_like_torch(ks[2], (D_H2, D_H1), D_H1),
        "b2": uniform_like_torch(ks[3], (D_H2,), D_H1),
        "w3": uniform_like_torch(ks[4], (D_OUT, D_H2), D_H2),
        "b3": uniform_like_torch(ks[5], (D_OUT,), D_H2),
    }


if __name__ == "__main__":
    key = jax.random.PRNGKey(0)
    k_x, k_p = jax.random.split(key)
    params = init_params(k_p)

    # 1) Small batch, single grid step, f32 path (min_pallas_batch=0 forces the
    #    Pallas path at this small shape) -- tight tolerance.
    B = 64
    x = jax.random.normal(k_x, (B, D_IN), jnp.float32)
    logits, hidden = net_forward(x, params, min_pallas_batch=0)
    jax.block_until_ready((logits, hidden))
    logits_ref, hidden_ref = _net_forward_reference(x, params)
    assert logits.shape == (B, D_OUT) and hidden.shape == (B, D_H1)
    assert jnp.allclose(logits, logits_ref, atol=1e-5), "logits mismatch (f32)"
    assert jnp.allclose(hidden, hidden_ref, atol=1e-5), "hidden mismatch (f32)"

    # 2) Non-multiple batch with a small tile -- exercises the pad-free cdiv
    #    grid with a ragged (masked) last block.
    B2 = 1037
    x2 = jax.random.normal(jax.random.PRNGKey(1), (B2, D_IN), jnp.float32)
    logits2, hidden2 = net_forward(x2, params, tile_m=256, min_pallas_batch=0)
    jax.block_until_ready((logits2, hidden2))
    logits2_ref, hidden2_ref = _net_forward_reference(x2, params)
    assert logits2.shape == (B2, D_OUT) and hidden2.shape == (B2, D_H1)
    assert jnp.allclose(logits2, logits2_ref, atol=1e-5), "logits mismatch (grid)"
    assert jnp.allclose(hidden2, hidden2_ref, atol=1e-5), "hidden mismatch (grid)"

    # 3) bf16 input path (operands bf16, f32 accumulate/epilogue) -- only taken
    #    when the caller already provides bf16 x; loose tolerance.
    x2_bf16 = x2.astype(jnp.bfloat16)
    logits3, hidden3 = net_forward(x2_bf16, params, tile_m=256, min_pallas_batch=0)
    jax.block_until_ready((logits3, hidden3))
    assert jnp.allclose(logits3, logits2_ref, atol=5e-2, rtol=5e-2), "logits mismatch (bf16)"
    assert jnp.allclose(hidden3, hidden2_ref, atol=5e-2, rtol=5e-2), "hidden mismatch (bf16)"

    print("KERNEL_OK")
</pallas_src>

<mosaic_0001>
module attributes {stable_mosaic.version = 11 : i64} {
  func.func @_mlp_kernel(%arg0: i32, %arg1: memref<64x30xf32, #tpu.memory_space<vmem>>, %arg2: memref<30x15xf32, #tpu.memory_space<vmem>>, %arg3: memref<1x15xf32, #tpu.memory_space<vmem>>, %arg4: memref<15x5xf32, #tpu.memory_space<vmem>>, %arg5: memref<1x5xf32, #tpu.memory_space<vmem>>, %arg6: memref<5x2xf32, #tpu.memory_space<vmem>>, %arg7: memref<1x2xf32, #tpu.memory_space<vmem>>, %arg8: memref<64x2xf32, #tpu.memory_space<vmem>>, %arg9: memref<64x15xf32, #tpu.memory_space<vmem>>) attributes {dimension_semantics = [#tpu.dimension_semantics<parallel>], iteration_bounds = array<i64: 1>, scalar_prefetch = 0 : i64, scratch_operands = 0 : i64, tpu.core_type = #tpu.core_type<tc>, window_params = [{transform_indices = @transform_0, window_bounds = array<i64: 64, 30>}, {pipeline_mode = #tpu.pipeline_mode<synchronous>, transform_indices = @transform_1, window_bounds = array<i64: 30, 15>}, {pipeline_mode = #tpu.pipeline_mode<synchronous>, transform_indices = @transform_2, window_bounds = array<i64: 1, 15>}, {pipeline_mode = #tpu.pipeline_mode<synchronous>, transform_indices = @transform_3, window_bounds = array<i64: 15, 5>}, {pipeline_mode = #tpu.pipeline_mode<synchronous>, transform_indices = @transform_4, window_bounds = array<i64: 1, 5>}, {pipeline_mode = #tpu.pipeline_mode<synchronous>, transform_indices = @transform_5, window_bounds = array<i64: 5, 2>}, {pipeline_mode = #tpu.pipeline_mode<synchronous>, transform_indices = @transform_6, window_bounds = array<i64: 1, 2>}, {transform_indices = @transform_7, window_bounds = array<i64: 64, 2>}, {transform_indices = @transform_8, window_bounds = array<i64: 64, 15>}]} {
    %c0 = arith.constant 0 : index
    %c0_0 = arith.constant 0 : index
    %0 = vector.load %arg1[%c0, %c0_0] : memref<64x30xf32, #tpu.memory_space<vmem>>, vector<64x30xf32>
    %c0_1 = arith.constant 0 : index
    %c0_2 = arith.constant 0 : index
    %1 = vector.load %arg2[%c0_1, %c0_2] : memref<30x15xf32, #tpu.memory_space<vmem>>, vector<30x15xf32>
    %cst = arith.constant dense<0.000000e+00> : vector<64x15xf32>
    %2 = tpu.matmul %0, %1, %cst {dimension_numbers = #tpu.dot_dimension_numbers<[1], [0], [0], [1], [0, 0, 1, 1], [], []>} : vector<64x30xf32>, vector<30x15xf32>, vector<64x15xf32> -> vector<64x15xf32>
    %c0_3 = arith.constant 0 : index
    %c0_4 = arith.constant 0 : index
    %3 = vector.load %arg3[%c0_3, %c0_4] : memref<1x15xf32, #tpu.memory_space<vmem>>, vector<1x15xf32>
    %4 = vector.broadcast %3 : vector<1x15xf32> to vector<64x15xf32>
    %5 = arith.addf %2, %4 : vector<64x15xf32>
    %cst_5 = arith.constant 0.000000e+00 : f32
    %6 = vector.broadcast %cst_5 : f32 to vector<64x15xf32>
    %7 = arith.maximumf %5, %6 : vector<64x15xf32>
    %c0_6 = arith.constant 0 : index
    %c0_7 = arith.constant 0 : index
    %8 = vector.load %arg9[%c0_6, %c0_7] : memref<64x15xf32, #tpu.memory_space<vmem>>, vector<64x15xf32>
    tpu.vector_store %arg9[%c0_6, %c0_7], %7 {strides = array<i32>} : memref<64x15xf32, #tpu.memory_space<vmem>>, vector<64x15xf32>,
    %c0_8 = arith.constant 0 : index
    %c0_9 = arith.constant 0 : index
    %9 = vector.load %arg4[%c0_8, %c0_9] : memref<15x5xf32, #tpu.memory_space<vmem>>, vector<15x5xf32>
    %cst_10 = arith.constant dense<0.000000e+00> : vector<64x5xf32>
    %10 = tpu.matmul %7, %9, %cst_10 {dimension_numbers = #tpu.dot_dimension_numbers<[1], [0], [0], [1], [0, 0, 1, 1], [], []>} : vector<64x15xf32>, vector<15x5xf32>, vector<64x5xf32> -> vector<64x5xf32>
    %c0_11 = arith.constant 0 : index
    %c0_12 = arith.constant 0 : index
    %11 = vector.load %arg5[%c0_11, %c0_12] : memref<1x5xf32, #tpu.memory_space<vmem>>, vector<1x5xf32>
    %12 = vector.broadcast %11 : vector<1x5xf32> to vector<64x5xf32>
    %13 = arith.addf %10, %12 : vector<64x5xf32>
    %cst_13 = arith.constant 0.000000e+00 : f32
    %14 = vector.broadcast %cst_13 : f32 to vector<64x5xf32>
    %15 = arith.maximumf %13, %14 : vector<64x5xf32>
    %c0_14 = arith.constant 0 : index
    %c0_15 = arith.constant 0 : index
    %16 = vector.load %arg6[%c0_14, %c0_15] : memref<5x2xf32, #tpu.memory_space<vmem>>, vector<5x2xf32>
    %cst_16 = arith.constant dense<0.000000e+00> : vector<64x2xf32>
    %17 = tpu.matmul %15, %16, %cst_16 {dimension_numbers = #tpu.dot_dimension_numbers<[1], [0], [0], [1], [0, 0, 1, 1], [], []>} : vector<64x5xf32>, vector<5x2xf32>, vector<64x2xf32> -> vector<64x2xf32>
    %c0_17 = arith.constant 0 : index
    %c0_18 = arith.constant 0 : index
    %18 = vector.load %arg7[%c0_17, %c0_18] : memref<1x2xf32, #tpu.memory_space<vmem>>, vector<1x2xf32>
    %19 = vector.broadcast %18 : vector<1x2xf32> to vector<64x2xf32>
    %20 = arith.addf %17, %19 : vector<64x2xf32>
    %c0_19 = arith.constant 0 : index
    %c0_20 = arith.constant 0 : index
    %21 = vector.load %arg8[%c0_19, %c0_20] : memref<64x2xf32, #tpu.memory_space<vmem>>, vector<64x2xf32>
    tpu.vector_store %arg8[%c0_19, %c0_20], %20 {strides = array<i32>} : memref<64x2xf32, #tpu.memory_space<vmem>>, vector<64x2xf32>,
    return
  }
  func.func @transform_0(%arg0: i32) -> (i32, i32) {
    %c0_i32 = arith.constant 0 : i32
    %c0_i32_0 = arith.constant 0 : i32
    return %arg0, %c0_i32 : i32, i32
  }
  func.func @transform_1(%arg0: i32) -> (i32, i32) {
    %c0_i32 = arith.constant 0 : i32
    %c0_i32_0 = arith.constant 0 : i32
    %c0_i32_1 = arith.constant 0 : i32
    return %c0_i32, %c0_i32_0 : i32, i32
  }
  func.func @transform_2(%arg0: i32) -> (i32, i32) {
    %c0_i32 = arith.constant 0 : i32
    %c0_i32_0 = arith.constant 0 : i32
    %c0_i32_1 = arith.constant 0 : i32
    return %c0_i32, %c0_i32_0 : i32, i32
  }
  func.func @transform_3(%arg0: i32) -> (i32, i32) {
    %c0_i32 = arith.constant 0 : i32
    %c0_i32_0 = arith.constant 0 : i32
    %c0_i32_1 = arith.constant 0 : i32
    return %c0_i32, %c0_i32_0 : i32, i32
  }
  func.func @transform_4(%arg0: i32) -> (i32, i32) {
    %c0_i32 = arith.constant 0 : i32
    %c0_i32_0 = arith.constant 0 : i32
    %c0_i32_1 = arith.constant 0 : i32
    return %c0_i32, %c0_i32_0 : i32, i32
  }
  func.func @transform_5(%arg0: i32) -> (i32, i32) {
    %c0_i32 = arith.constant 0 : i32
    %c0_i32_0 = arith.constant 0 : i32
    %c0_i32_1 = arith.constant 0 : i32
    return %c0_i32, %c0_i32_0 : i32, i32
  }
  func.func @transform_6(%arg0: i32) -> (i32, i32) {
    %c0_i32 = arith.constant 0 : i32
    %c0_i32_0 = arith.constant 0 : i32
    %c0_i32_1 = arith.constant 0 : i32
    return %c0_i32, %c0_i32_0 : i32, i32
  }
  func.func @transform_7(%arg0: i32) -> (i32, i32) {
    %c0_i32 = arith.constant 0 : i32
    %c0_i32_0 = arith.constant 0 : i32
    return %arg0, %c0_i32 : i32, i32
  }
  func.func @transform_8(%arg0: i32) -> (i32, i32) {
    %c0_i32 = arith.constant 0 : i32
    %c0_i32_0 = arith.constant 0 : i32
    return %arg0, %c0_i32 : i32, i32
  }
}

</mosaic_0001>

<bundles_post_ra>
// kernel: tpu_custom_call.1
= control target key start
LH: loop header
LB: loop body
LE: loop exit
PB: predicated region body
PF: predicated region fallthrough
CT: control target
= control target key end

     0   :  { %vm72_vm0 = vcmask 1045504   ;;  %vm47_vm1 = vcmask 244736   ;;  %vm637_vm2 = vmmov 1   ;;  %vm231_vm4 = vcmask 1046528   ;;  %s827_s1 = inlined_call_operand.vmem [shape: f32[30,15], index: 1, kind: input, shape index: {}]   ;;  %s828_s0 = inlined_call_operand.vmem [shape: f32[64,30], index: 0, kind: input, shape index: {}]   ;;  %s829_s3 = inlined_call_operand.vmem [shape: f32[15,5], index: 3, kind: input, shape index: {}]   ;;  %s830_s5 = inlined_call_operand.vmem [shape: f32[5,2], index: 5, kind: input, shape index: {}]   ;;  %s831_s2 = inlined_call_operand.vmem [shape: f32[1,15], index: 2, kind: input, shape index: {}]   ;;  %s832_s8 = inlined_call_operand.vmem [shape: f32[64,15], index: 8, kind: output, shape index: {1}]   ;;  %s833_s4 = inlined_call_operand.vmem [shape: f32[1,5], index: 4, kind: input, shape index: {}]   ;;  %s834_s6 = inlined_call_operand.vmem [shape: f32[1,2], index: 6, kind: input, shape index: {}]   ;;  %s835_s7 = inlined_call_operand.vmem [shape: f32[64,2], index: 7, kind: output, shape index: {0}]  }
   0x1   :  { %v36_v0 = vld [vmem:[%s827_s1] sm:$0xff]  ;;  %v37_v1 = vld [vmem:[%s827_s1 + $0x8] sm:$0xff]  ;;  %v38_v2 = vld [vmem:[%s827_s1 + $0x10] sm:$0xff]  ;;  %vm381_vm6 = vcmask 1044480   ;;  %vm189_vm7 = vcmask 121856   ;;  %vm356_vm8 = vcmask 39936  }
   0x2   :  { %v618_v3 = vpack.c.bf16 %v37_v1, %v36_v0  ;;  %v39_v4 = vld [vmem:[%s827_s1 + $0x18] sm:$0x3f]  ;;  %v28_v5 = vld [vmem:[%s828_s0] sm:$0xff]  ;;  %vm623_vm3 = vmpackc.low %vm72_vm0, %vm637_vm2  ;;  %vm490_vm9 = vcmask 15360  }
   0x3   :  { %v622_v6 = vpack.c.bf16 %v39_v4, %v38_v2  ;;  %576 = vmatprep.mubr.msk.f32.mxu0 %vm47_vm1, %v28_v5  ;;  %v198_v7 = vld [vmem:[%s829_s3] sm:$0xff]  ;;  %v199_v8 = vld [vmem:[%s829_s3 + $0x8] sm:$0x7f]  ;;  %vm629_vm5 = vmpackc.low %vm231_vm4, %vm637_vm2 }
   0x4   :  { %619 = vmatprep.subr.bf16.mxu0 %v618_v3  ;;  %v628_v9 = vpack.c.bf16 %v199_v8, %v198_v7  ;;  %v29_v10 = vld [vmem:[%s828_s0 + $0x8] sm:$0xff]  ;;  %v30_v11 = vld [vmem:[%s828_s0 + $0x10] sm:$0xff]  ;;  %v31_v12 = vld [vmem:[%s828_s0 + $0x18] sm:$0xff] }
   0x5   :  { %621 = vmatpush3.bf16.msra.mxu0 %v618_v3  ;;  %v32_v13 = vld [vmem:[%s828_s0 + $0x20] sm:$0xff]  ;;  %v33_v14 = vld [vmem:[%s828_s0 + $0x28] sm:$0xff]  ;;  %v34_v15 = vld [vmem:[%s828_s0 + $0x30] sm:$0xff] }
   0x6   :  { %624 = vmatprep.subr.msk.bf16.mxu0 %vm623_vm3, %v622_v6  ;;  %634 = vmatprep.subr.msk.bf16.mxu1 %vm629_vm5, %v628_v9  ;;  %v35_v16 = vld [vmem:[%s828_s0 + $0x38] sm:$0xff]  ;;  %v348_v17 = vld [vmem:[%s830_s5] sm:$0x1f] }
   0x7   :  { %635 = vmatpush3.bf16.msk.msra.mxu1 %vm629_vm5, %v628_v9  ;;  %v507_v18 = vld [vmem:[%s831_s2] ss:$0 sm:$0xff] }
   0x8   :  { %604 = vmatprep.subr.msk.mxu1 %vm381_vm6, %v348_v17  ;;  %v517_v43 = vld [vmem:[%s833_s4] ss:$0 sm:$0xff] }
   0x9   :  { %627 = vmatpush3.bf16.msk.msra.mxu0 %vm623_vm3, %v622_v6  ;;  %v527_v4 = vld [vmem:[%s834_s6] ss:$0 sm:$0xff] }
   0xa   :  { %630 = vmatprep.subr.msk.bf16.mxu0 %vm629_vm5, %v628_v9 }
   0xc   :  { %577 = vmatmul.mubr.msk.f32.vlgmr.msra.gmra.mrb[0].mxu0 %vm47_vm1, %v29_v10 }
   0xd   :  { %579 = vmatprep.mubr.msk.f32.mxu0 %vm47_vm1, %v30_v11  ;;  %633 = vmatpush3.bf16.msk.msra.mxu0 %vm629_vm5, %v628_v9 }
  0x10   :  { %580 = vmatmul.mubr.msk.f32.gmra.mrb[2].mxu0 %vm47_vm1, %v31_v12 }
  0x11   :  { %582 = vmatprep.mubr.msk.f32.mxu0 %vm47_vm1, %v32_v13 }
  0x14   :  { %583 = vmatmul.mubr.msk.f32.gmra.mrb[4].mxu0 %vm47_vm1, %v33_v14 }
  0x15   :  { %585 = vmatprep.mubr.msk.f32.mxu0 %vm47_vm1, %v34_v15 }
  0x18   :  { %586 = vmatmul.mubr.msk.f32.gmra.mrb[6].mxu0 %vm47_vm1, %v35_v16 }
  0xdf   :  { %v578_v19 = vpop.f32.mrb[0].mxu0 }
  0xe0   :  { %v148_v20 = vadd.f32 %v578_v19, %v507_v18  ;;  %v142_v21 = vpop.f32.mrb[1].mxu0 }
  0xe1   :  { %v143_v22 = vadd.f32 %v507_v18, %v142_v21 }
  0xe2   :  { %v182_v23 = vmax.f32 %v148_v20, 0.0 }
  0xe3   :  { %v181_v24 = vmax.f32 %v143_v22, 0.0  ;;  %v581_v25 = vpop.f32.mrb[2].mxu0 }
  0xe4   :  { %191 = vst.msk [vmem:[%s832_s8 + $0x8] sm:$0xff] %vm189_vm7, %v182_v23  ;;  %v158_v26 = vadd.f32 %v581_v25, %v507_v18  ;;  %v152_v27 = vpop.f32.mrb[3].mxu0 }
  0xe5   :  { %190 = vst.msk [vmem:[%s832_s8] sm:$0xff] %vm189_vm7, %v181_v24  ;;  %v153_v28 = vadd.f32 %v507_v18, %v152_v27  ;;  %592 = vmatprep.mubr.msk.f32.mxu0 %vm189_vm7, %v181_v24 }
  0xe6   :  { %v184_v29 = vmax.f32 %v158_v26, 0.0  ;;  %593 = vmatmul.mubr.msk.f32.vlgmr.msra.gmra.mrb[8].mxu0 %vm189_vm7, %v182_v23 }
  0xe7   :  { %v183_v30 = vmax.f32 %v153_v28, 0.0  ;;  %v584_v31 = vpop.f32.mrb[4].mxu0 }
  0xe8   :  { %193 = vst.msk [vmem:[%s832_s8 + $0x18] sm:$0xff] %vm189_vm7, %v184_v29  ;;  %v168_v32 = vadd.f32 %v584_v31, %v507_v18  ;;  %v162_v33 = vpop.f32.mrb[5].mxu0 }
  0xe9   :  { %192 = vst.msk [vmem:[%s832_s8 + $0x10] sm:$0xff] %vm189_vm7, %v183_v30  ;;  %v163_v34 = vadd.f32 %v507_v18, %v162_v33  ;;  %595 = vmatprep.mubr.msk.f32.mxu1 %vm189_vm7, %v183_v30 }
  0xea   :  { %v186_v35 = vmax.f32 %v168_v32, 0.0  ;;  %596 = vmatmul.mubr.msk.f32.vlgmr.msra.gmra.mrb[0].mxu1 %vm189_vm7, %v184_v29 }
  0xeb   :  { %v185_v36 = vmax.f32 %v163_v34, 0.0  ;;  %v587_v37 = vpop.f32.mrb[6].mxu0  ;;  %605 = vmatpush3.msk.msra.mxu1 %vm381_vm6, %v348_v17 }
  0xec   :  { %195 = vst.msk [vmem:[%s832_s8 + $0x28] sm:$0xff] %vm189_vm7, %v186_v35  ;;  %v178_v38 = vadd.f32 %v587_v37, %v507_v18  ;;  %v172_v39 = vpop.f32.mrb[7].mxu0 }
  0xed   :  { %194 = vst.msk [vmem:[%s832_s8 + $0x20] sm:$0xff] %vm189_vm7, %v185_v36  ;;  %v173_v40 = vadd.f32 %v507_v18, %v172_v39  ;;  %598 = vmatprep.mubr.msk.f32.mxu1 %vm189_vm7, %v185_v36 }
  0xee   :  { %v188_v41 = vmax.f32 %v178_v38, 0.0  ;;  %599 = vmatmul.mubr.msk.f32.gmra.mrb[2].mxu1 %vm189_vm7, %v186_v35 }
  0xef   :  { %v187_v42 = vmax.f32 %v173_v40, 0.0 }
  0xf0   :  { %197 = vst.msk [vmem:[%s832_s8 + $0x38] sm:$0xff] %vm189_vm7, %v188_v41 }
  0xf1   :  { %196 = vst.msk [vmem:[%s832_s8 + $0x30] sm:$0xff] %vm189_vm7, %v187_v42  ;;  %601 = vmatprep.mubr.msk.f32.mxu1 %vm189_vm7, %v187_v42 }
  0xf2   :  { %602 = vmatmul.mubr.msk.f32.gmra.mrb[4].mxu1 %vm189_vm7, %v188_v41 }
 0x1b9   :  { %v594_v44 = vpop.f32.mrb[8].mxu0 }
 0x1ba   :  { %v307_v45 = vadd.f32 %v594_v44, %v517_v43  ;;  %v301_v46 = vpop.f32.mrb[9].mxu0 }
 0x1bb   :  { %v302_v47 = vadd.f32 %v517_v43, %v301_v46 }
 0x1bc   :  { %v341_v50 = vmax.f32 %v307_v45, 0.0 }
 0x1bd   :  { %v340_v48 = vmax.f32 %v302_v47, 0.0  ;;  %v597_v49 = vpop.f32.mrb[0].mxu1 }
 0x1be   :  { %v317_v51 = vadd.f32 %v597_v49, %v517_v43  ;;  %v311_v52 = vpop.f32.mrb[1].mxu1 }
 0x1bf   :  { %v312_v53 = vadd.f32 %v517_v43, %v311_v52  ;;  %606 = vmatprep.mubr.msk.f32.mxu1 %vm356_vm8, %v340_v48 }
 0x1c0   :  { %607 = vmatmul.mubr.msk.f32.vlgmr.msra.gmra.mrb[6].mxu1 %vm356_vm8, %v341_v50  ;;  %v343_v56 = vmax.f32 %v317_v51, 0.0 }
 0x1c1   :  { %v342_v54 = vmax.f32 %v312_v53, 0.0  ;;  %v600_v55 = vpop.f32.mrb[2].mxu1 }
 0x1c2   :  { %v327_v57 = vadd.f32 %v600_v55, %v517_v43  ;;  %v321_v58 = vpop.f32.mrb[3].mxu1 }
 0x1c3   :  { %v322_v59 = vadd.f32 %v517_v43, %v321_v58  ;;  %609 = vmatprep.mubr.msk.f32.mxu1 %vm356_vm8, %v342_v54 }
 0x1c4   :  { %610 = vmatmul.mubr.msk.f32.gmra.mrb[8].mxu1 %vm356_vm8, %v343_v56  ;;  %v345_v62 = vmax.f32 %v327_v57, 0.0 }
 0x1c5   :  { %v344_v60 = vmax.f32 %v322_v59, 0.0  ;;  %v603_v61 = vpop.f32.mrb[4].mxu1 }
 0x1c6   :  { %v337_v63 = vadd.f32 %v603_v61, %v517_v43  ;;  %v331_v0 = vpop.f32.mrb[5].mxu1 }
 0x1c7   :  { %v332_v1 = vadd.f32 %v517_v43, %v331_v0  ;;  %612 = vmatprep.mubr.msk.f32.mxu1 %vm356_vm8, %v344_v60 }
 0x1c8   :  { %613 = vmatmul.mubr.msk.f32.gmra.mrb[10].mxu1 %vm356_vm8, %v345_v62  ;;  %v347_v3 = vmax.f32 %v337_v63, 0.0 }
 0x1c9   :  { %v346_v2 = vmax.f32 %v332_v1, 0.0 }
 0x1cb   :  { %615 = vmatprep.mubr.msk.f32.mxu1 %vm356_vm8, %v346_v2 }
 0x1cc   :  { %616 = vmatmul.mubr.msk.f32.gmra.mrb[12].mxu1 %vm356_vm8, %v347_v3 }
 0x293   :  { %v608_v5 = vpop.f32.mrb[6].mxu1 }
 0x294   :  { %v457_v6 = vadd.f32 %v608_v5, %v527_v4  ;;  %v451_v7 = vpop.f32.mrb[7].mxu1 }
 0x295   :  { %v452_v8 = vadd.f32 %v527_v4, %v451_v7 }
 0x296   :  { %492 = vst.msk [vmem:[%s835_s7 + $0x8] sm:$0xff] %vm490_vm9, %v457_v6 }
 0x297   :  { %491 = vst.msk [vmem:[%s835_s7] sm:$0xff] %vm490_vm9, %v452_v8  ;;  %v611_v9 = vpop.f32.mrb[8].mxu1 }
 0x298   :  { %v467_v10 = vadd.f32 %v611_v9, %v527_v4  ;;  %v461_v11 = vpop.f32.mrb[9].mxu1 }
 0x299   :  { %v462_v12 = vadd.f32 %v527_v4, %v461_v11 }
 0x29a   :  { %494 = vst.msk [vmem:[%s835_s7 + $0x18] sm:$0xff] %vm490_vm9, %v467_v10 }
 0x29b   :  { %493 = vst.msk [vmem:[%s835_s7 + $0x10] sm:$0xff] %vm490_vm9, %v462_v12  ;;  %v614_v13 = vpop.f32.mrb[10].mxu1 }
 0x29c   :  { %v477_v14 = vadd.f32 %v614_v13, %v527_v4  ;;  %v471_v15 = vpop.f32.mrb[11].mxu1 }
 0x29d   :  { %v472_v16 = vadd.f32 %v527_v4, %v471_v15 }
 0x29e   :  { %496 = vst.msk [vmem:[%s835_s7 + $0x28] sm:$0xff] %vm490_vm9, %v477_v14 }
 0x29f   :  { %495 = vst.msk [vmem:[%s835_s7 + $0x20] sm:$0xff] %vm490_vm9, %v472_v16  ;;  %v617_v17 = vpop.f32.mrb[12].mxu1 }
 0x2a0   :  { %v487_v18 = vadd.f32 %v617_v17, %v527_v4  ;;  %v481_v19 = vpop.f32.mrb[13].mxu1 }
 0x2a1   :  { %v482_v20 = vadd.f32 %v527_v4, %v481_v19 }
 0x2a2   :  { %498 = vst.msk [vmem:[%s835_s7 + $0x38] sm:$0xff] %vm490_vm9, %v487_v18 }
 0x2a3   :  { %497 = vst.msk [vmem:[%s835_s7 + $0x30] sm:$0xff] %vm490_vm9, %v482_v20 }

</bundles_post_ra>
